<compile_context>
chip_gen: v7x
topology: tpu7x:2x2x1
jax: 0.10.0
libtpu: 0.0.40
codegen_flags: <defaults>
</compile_context>

<pallas_src>
import math
from functools import partial

import jax
import jax.numpy as jnp
from jax import lax
from jax.experimental import pallas as pl
from jax.experimental.pallas import tpu as pltpu


_SQRT_HALF = 1.0 / math.sqrt(2.0)


def _gelu_exact(x):
    # PyTorch nn.GELU() default is the exact erf-based GELU (computed in f32).
    # (tanh-approx GELU would be cheaper on v5e but changes numerics vs nn.GELU.)
    return 0.5 * x * (1.0 + lax.erf(x * _SQRT_HALF))


def _round_up(x, m):
    return ((x + m - 1) // m) * m


def _pick_h_tile(H, max_th=256):
    # Largest lane-dense (multiple-of-128) chunk that divides H; else full H.
    for th in (max_th, 512, 256, 128):
        if th <= H and H % th == 0:
            return th
    return H


def ffn_kernel(x_ref, w1_ref, b1_ref, w2_ref, b2_ref, o_ref, acc_ref):
    j = pl.program_id(1)

    @pl.when(j == 0)
    def _init():
        acc_ref[...] = jnp.zeros_like(acc_ref)

    # First matmul on the native input dtype (no eager f32 cast of x/W1);
    # f32 accumulation, then bias + exact GELU in f32.
    h = jnp.dot(x_ref[...], w1_ref[...], preferred_element_type=jnp.float32)
    h = _gelu_exact(h + b1_ref[...].astype(jnp.float32))

    # Second matmul: partial contraction over this H-chunk into the f32 accumulator.
    acc_ref[...] += jnp.dot(
        h.astype(w2_ref.dtype), w2_ref[...], preferred_element_type=jnp.float32
    )

    @pl.when(j == pl.num_programs(1) - 1)
    def _finalize():
        # Dropout(p) in eval mode is identity.
        # TODO(synk): train-mode dropout (pltpu.prng_seed + prng_random_bits mask)
        # is not emitted here.
        o_ref[...] = (acc_ref[...] + b2_ref[...].astype(jnp.float32)).astype(o_ref.dtype)


def ffn_forward(x, w1, b1, w2, b2, *, tm=256, th=256):
    """x: (B, S, E); w1: (E, H); b1: (H,); w2: (H, E); b2: (E,)."""
    B, S, E = x.shape
    H = w1.shape[1]
    M = B * S

    # Token tile: large (MXU-friendly) but never bigger than the padded token count.
    tm_eff = min(tm, _round_up(M, 8))
    m_pad = _round_up(M, tm_eff)
    th_eff = _pick_h_tile(H, max_th=th)
    n_h = H // th_eff

    x2d = x.reshape(M, E)
    if m_pad != M:
        x2d = jnp.pad(x2d, ((0, m_pad - M), (0, 0)))
    b1_2d = b1.reshape(1, H)
    b2_2d = b2.reshape(1, E)

    out2d = pl.pallas_call(
        ffn_kernel,
        out_shape=jax.ShapeDtypeStruct((m_pad, E), x.dtype),
        grid_spec=pltpu.PrefetchScalarGridSpec(
            num_scalar_prefetch=0,
            grid=(m_pad // tm_eff, n_h),
            in_specs=[
                pl.BlockSpec((tm_eff, E), lambda i, j: (i, 0)),   # x tile (resident across j)
                pl.BlockSpec((E, th_eff), lambda i, j: (0, j)),   # W1 H-chunk
                pl.BlockSpec((1, th_eff), lambda i, j: (0, j)),   # b1 H-chunk
                pl.BlockSpec((th_eff, E), lambda i, j: (j, 0)),   # W2 H-chunk
                pl.BlockSpec((1, E), lambda i, j: (0, 0)),        # b2 (added at finalize)
            ],
            out_specs=pl.BlockSpec((tm_eff, E), lambda i, j: (i, 0)),
            scratch_shapes=[pltpu.VMEM((tm_eff, E), jnp.float32)],  # f32 accumulator
        ),
        compiler_params=pltpu.CompilerParams(
            dimension_semantics=("parallel", "arbitrary"),
        ),
    )(x2d, w1, b1_2d, w2, b2_2d)

    if m_pad != M:
        out2d = out2d[:M]
    return out2d.reshape(B, S, E)


def init_ffn_params(key, n_embed, ffn_scaling):
    hidden = n_embed * ffn_scaling
    k1, k2, k3, k4 = jax.random.split(key, 4)
    # Mimics nn.Linear's uniform(-1/sqrt(fan_in), 1/sqrt(fan_in)) init.
    lim1 = 1.0 / math.sqrt(n_embed)
    lim2 = 1.0 / math.sqrt(hidden)
    w1 = jax.random.uniform(k1, (n_embed, hidden), jnp.float32, -lim1, lim1)
    b1 = jax.random.uniform(k2, (hidden,), jnp.float32, -lim1, lim1)
    w2 = jax.random.uniform(k3, (hidden, n_embed), jnp.float32, -lim2, lim2)
    b2 = jax.random.uniform(k4, (n_embed,), jnp.float32, -lim2, lim2)
    return w1, b1, w2, b2


if __name__ == "__main__":
    # Small but lane-dense shapes consistent with the module:
    # n_embed=128 (multiple of 128 -> unmasked vector stores), ffn_scaling=4 -> hidden=512.
    B, S, E, SCALE = 2, 8, 128, 4
    key = jax.random.PRNGKey(0)
    kx, kp = jax.random.split(key)

    x = jax.random.normal(kx, (B, S, E), dtype=jnp.float32)
    w1, b1, w2, b2 = init_ffn_params(kp, E, SCALE)

    out = jax.jit(partial(ffn_forward, tm=256, th=256))(x, w1, b1, w2, b2)
    out = jax.block_until_ready(out)

    # Pure-JAX reference (eval-mode FFN: Linear -> GELU -> Linear, dropout = identity).
    x2d = x.reshape(-1, E)
    ref = (_gelu_exact(x2d @ w1 + b1) @ w2 + b2).reshape(B, S, E)
    assert jnp.allclose(out, ref, atol=1e-4, rtol=1e-4), "mismatch vs reference"

    print("KERNEL_OK")
</pallas_src>

<mosaic_0001>
module attributes {stable_mosaic.version = 11 : i64} {
  func.func @ffn_kernel(%arg0: i32, %arg1: i32, %arg2: memref<16x128xf32, #tpu.memory_space<vmem>>, %arg3: memref<128x256xf32, #tpu.memory_space<vmem>>, %arg4: memref<1x256xf32, #tpu.memory_space<vmem>>, %arg5: memref<256x128xf32, #tpu.memory_space<vmem>>, %arg6: memref<1x128xf32, #tpu.memory_space<vmem>>, %arg7: memref<16x128xf32, #tpu.memory_space<vmem>>, %arg8: memref<16x128xf32, #tpu.memory_space<vmem>>) attributes {dimension_semantics = [#tpu.dimension_semantics<parallel>, #tpu.dimension_semantics<arbitrary>], iteration_bounds = array<i64: 1, 2>, scalar_prefetch = 0 : i64, scratch_operands = 1 : i64, tpu.core_type = #tpu.core_type<tc>, window_params = [{transform_indices = @transform_0, window_bounds = array<i64: 16, 128>}, {transform_indices = @transform_1, window_bounds = array<i64: 128, 256>}, {transform_indices = @transform_2, window_bounds = array<i64: 1, 256>}, {transform_indices = @transform_3, window_bounds = array<i64: 256, 128>}, {pipeline_mode = #tpu.pipeline_mode<synchronous>, transform_indices = @transform_4, window_bounds = array<i64: 1, 128>}, {transform_indices = @transform_5, window_bounds = array<i64: 16, 128>}]} {
    %c0_i32 = arith.constant 0 : i32
    %0 = arith.cmpi eq, %arg1, %c0_i32 : i32
    %1 = arith.extui %0 : i1 to i32
    %c0_i32_0 = arith.constant 0 : i32
    %2 = arith.cmpi ne, %1, %c0_i32_0 : i32
    scf.if %2 {
      %cst_17 = arith.constant 0.000000e+00 : f32
      %25 = vector.broadcast %cst_17 : f32 to vector<16x128xf32>
      %c0_18 = arith.constant 0 : index
      %c0_19 = arith.constant 0 : index
      %26 = vector.load %arg8[%c0_18, %c0_19] : memref<16x128xf32, #tpu.memory_space<vmem>>, vector<16x128xf32>
      tpu.vector_store %arg8[%c0_18, %c0_19], %25 {strides = array<i32>} : memref<16x128xf32, #tpu.memory_space<vmem>>, vector<16x128xf32>,
    } else {
    }
    %c0 = arith.constant 0 : index
    %c0_1 = arith.constant 0 : index
    %3 = vector.load %arg2[%c0, %c0_1] : memref<16x128xf32, #tpu.memory_space<vmem>>, vector<16x128xf32>
    %c0_2 = arith.constant 0 : index
    %c0_3 = arith.constant 0 : index
    %4 = vector.load %arg3[%c0_2, %c0_3] : memref<128x256xf32, #tpu.memory_space<vmem>>, vector<128x256xf32>
    %cst = arith.constant dense<0.000000e+00> : vector<16x256xf32>
    %5 = tpu.matmul %3, %4, %cst {dimension_numbers = #tpu.dot_dimension_numbers<[1], [0], [0], [1], [0, 0, 1, 1], [], []>} : vector<16x128xf32>, vector<128x256xf32>, vector<16x256xf32> -> vector<16x256xf32>
    %c0_4 = arith.constant 0 : index
    %c0_5 = arith.constant 0 : index
    %6 = vector.load %arg4[%c0_4, %c0_5] : memref<1x256xf32, #tpu.memory_space<vmem>>, vector<1x256xf32>
    %7 = vector.broadcast %6 : vector<1x256xf32> to vector<16x256xf32>
    %8 = arith.addf %5, %7 : vector<16x256xf32>
    %cst_6 = arith.constant 5.000000e-01 : f32
    %9 = vector.broadcast %cst_6 : f32 to vector<16x256xf32>
    %10 = arith.mulf %9, %8 : vector<16x256xf32>
    %cst_7 = arith.constant 0.707106769 : f32
    %11 = vector.broadcast %cst_7 : f32 to vector<16x256xf32>
    %12 = arith.mulf %8, %11 : vector<16x256xf32>
    %13 = math.erf %12 : vector<16x256xf32>
    %cst_8 = arith.constant 1.000000e+00 : f32
    %14 = vector.broadcast %cst_8 : f32 to vector<16x256xf32>
    %15 = arith.addf %14, %13 : vector<16x256xf32>
    %16 = arith.mulf %10, %15 : vector<16x256xf32>
    %c0_9 = arith.constant 0 : index
    %c0_10 = arith.constant 0 : index
    %17 = vector.load %arg8[%c0_9, %c0_10] : memref<16x128xf32, #tpu.memory_space<vmem>>, vector<16x128xf32>
    %c0_11 = arith.constant 0 : index
    %c0_12 = arith.constant 0 : index
    %18 = vector.load %arg5[%c0_11, %c0_12] : memref<256x128xf32, #tpu.memory_space<vmem>>, vector<256x128xf32>
    %cst_13 = arith.constant dense<0.000000e+00> : vector<16x128xf32>
    %19 = tpu.matmul %16, %18, %cst_13 {dimension_numbers = #tpu.dot_dimension_numbers<[1], [0], [0], [1], [0, 0, 1, 1], [], []>} : vector<16x256xf32>, vector<256x128xf32>, vector<16x128xf32> -> vector<16x128xf32>
    %20 = arith.addf %17, %19 : vector<16x128xf32>
    %c0_14 = arith.constant 0 : index
    %c0_15 = arith.constant 0 : index
    %21 = vector.load %arg8[%c0_14, %c0_15] : memref<16x128xf32, #tpu.memory_space<vmem>>, vector<16x128xf32>
    tpu.vector_store %arg8[%c0_14, %c0_15], %20 {strides = array<i32>} : memref<16x128xf32, #tpu.memory_space<vmem>>, vector<16x128xf32>,
    %c1_i32 = arith.constant 1 : i32
    %22 = arith.cmpi eq, %arg1, %c1_i32 : i32
    %23 = arith.extui %22 : i1 to i32
    %c0_i32_16 = arith.constant 0 : i32
    %24 = arith.cmpi ne, %23, %c0_i32_16 : i32
    scf.if %24 {
      %c0_17 = arith.constant 0 : index
      %c0_18 = arith.constant 0 : index
      %25 = vector.load %arg8[%c0_17, %c0_18] : memref<16x128xf32, #tpu.memory_space<vmem>>, vector<16x128xf32>
      %c0_19 = arith.constant 0 : index
      %c0_20 = arith.constant 0 : index
      %26 = vector.load %arg6[%c0_19, %c0_20] : memref<1x128xf32, #tpu.memory_space<vmem>>, vector<1x128xf32>
      %27 = vector.broadcast %26 : vector<1x128xf32> to vector<16x128xf32>
      %28 = arith.addf %25, %27 : vector<16x128xf32>
      %c0_21 = arith.constant 0 : index
      %c0_22 = arith.constant 0 : index
      %29 = vector.load %arg7[%c0_21, %c0_22] : memref<16x128xf32, #tpu.memory_space<vmem>>, vector<16x128xf32>
      tpu.vector_store %arg7[%c0_21, %c0_22], %28 {strides = array<i32>} : memref<16x128xf32, #tpu.memory_space<vmem>>, vector<16x128xf32>,
    } else {
    }
    return
  }
  func.func @transform_0(%arg0: i32, %arg1: i32) -> (i32, i32) {
    %c0_i32 = arith.constant 0 : i32
    %c0_i32_0 = arith.constant 0 : i32
    return %arg0, %c0_i32 : i32, i32
  }
  func.func @transform_1(%arg0: i32, %arg1: i32) -> (i32, i32) {
    %c0_i32 = arith.constant 0 : i32
    %c0_i32_0 = arith.constant 0 : i32
    return %c0_i32, %arg1 : i32, i32
  }
  func.func @transform_2(%arg0: i32, %arg1: i32) -> (i32, i32) {
    %c0_i32 = arith.constant 0 : i32
    %c0_i32_0 = arith.constant 0 : i32
    return %c0_i32, %arg1 : i32, i32
  }
  func.func @transform_3(%arg0: i32, %arg1: i32) -> (i32, i32) {
    %c0_i32 = arith.constant 0 : i32
    %c0_i32_0 = arith.constant 0 : i32
    return %arg1, %c0_i32 : i32, i32
  }
  func.func @transform_4(%arg0: i32, %arg1: i32) -> (i32, i32) {
    %c0_i32 = arith.constant 0 : i32
    %c0_i32_0 = arith.constant 0 : i32
    %c0_i32_1 = arith.constant 0 : i32
    return %c0_i32, %c0_i32_0 : i32, i32
  }
  func.func @transform_5(%arg0: i32, %arg1: i32) -> (i32, i32) {
    %c0_i32 = arith.constant 0 : i32
    %c0_i32_0 = arith.constant 0 : i32
    return %arg0, %c0_i32 : i32, i32
  }
}

</mosaic_0001>

<bundles_post_ra>
// kernel: ffn_forward.1
= control target key start
LH: loop header
LB: loop body
LE: loop exit
PB: predicated region body
PF: predicated region fallthrough
CT: control target
= control target key end

     0   :  { %s1480_s0 = inlined_call_operand.hbm [shape: f32[16,128], index: 0, kind: input, shape index: {}]   ;;  %s1481_s1 = inlined_call_operand.hbm [shape: f32[128,512], index: 1, kind: input, shape index: {}]   ;;  %s1482_s2 = inlined_call_operand.vmem [shape: f32[1,512], index: 2, kind: input, shape index: {}]   ;;  %s1483_s3 = inlined_call_operand.hbm [shape: f32[512,128], index: 3, kind: input, shape index: {}]   ;;  %s1484_s4 = inlined_call_operand.vmem [shape: f32[1,128], index: 4, kind: input, shape index: {}]   ;;  %s1485_s5 = inlined_call_operand.hbm [shape: f32[16,128], index: 5, kind: output, shape index: {}]  }
   0x1   :  { %1492 = sst [smem:[#allocation13_spill]] %s1481_s1 }
   0x2   :  { %10 = vsyncpa [#allocation4], 0 }
   0x3   :  { %11 = vsyncpa [#allocation7], 0 }
   0x4   :  { %13 = vsyncpa [#allocation7 + $0x1], 0 }
   0x5   :  { %14 = vsyncpa [#allocation5], 0  ;;  %s1164_s18 = smov 0   ;;  %s1166_s19 = smov 0  }
   0x6   :  { %s1168_s20 = smov 0   ;;  %s1170_s21 = smov 0  }
   0x7   :  { %s1172_s22 = smov 0   ;;  %s1174_s23 = smov 0  }
   0x8 LB: > { %s29_s24 = sadd.s32 1, %s1115_s22  ;;  %s65_s25 = sadd.s32 1, %s1107_s20  ;;  %s1119_s23 = sphi %s1174_s23, %s20_s23   ;;  %s1115_s22 = sphi %s1172_s22, %s1509_s22   ;;  %s1111_s21 = sphi %s1170_s21, %s1508_s21   ;;  %s1107_s20 = sphi %s1168_s20, %s1507_s20   ;;  %s1103_s19 = sphi %s1166_s19, %s1506_s19   ;;  %s1099_s18 = sphi %s1164_s18, %s1505_s18  }
   0x9   : > { %p30_p0 = scmp.ge.s32.totalorder %s29_s24, 2  ;;  %p72_p1 = scmp.ne.s32.totalorder %s1107_s20, %s1103_s19 }
   0xa   : > { %p73_p2 = scmp.eq.s32.totalorder %s1119_s23, 0  ;;  %p876_p4 = scmp.lt.s32.totalorder %s1119_s23, 2 }
   0xb   : > { %s1511_s24 = smov (%p30_p0, %s29_s24), 0  ;;  %s220_s27 = sand.u32 1, %s1119_s23  }
   0xc   : > { %p74_p3 = por %p73_p2, %p72_p1  ;;  %s62_s26 = ssub.s32 %s1115_s22, %s1511_s24 }
   0xd   : > { %p63_p5 = scmp.eq.s32.totalorder %s62_s26, 0  ;;  %s222_s28 = sand.u32 1, %s1107_s20  }
   0xe   : > { %s748_s29 = sshll.u32 %s1115_s22, 8  ;;  %s1210_s6 = sshll.u32 %s222_s28, 8 }
   0xf   : > { %s1208_s30 = scalar_select %p63_p5, %s1107_s20, %s65_s25  }
  0x10   : > { %s1493_s1 = sld [smem:[#allocation13_spill]]  ;;  %p1217_p6 = pnand %p876_p4, %p74_p3 }
  0x11   : > { %s224_s11 = scalar_lea.vmem [#allocation6], %s1210_s6  ;;  %s1224_s13 = scalar_lea.sflag [#allocation7], %s220_s27 }
  0x12   : > { %s1494_s10 = scalar_select %p1217_p6, 1, 0 }
  0x13   : > { %s231_s12 = sshll.u32 %s224_s11, 4  ;;  %p1487_p8 = pneg %p1217_p6  ;;  %s1222_s12 = int_to_ptr.vmem [resolvable:$true] %s231_s12 }
  0x16   : > { %s1215_s9 = scalar_lea.hbm %s1493_s1, %s748_s29  ;;  %s952_s17 = scalar_lea.hbm %s1493_s1, 8192 }
  0x17   : > { %s947_s14 = scalar_lea.hbm %s1215_s9, 4096  ;;  %p953_p11 = scmp.lt.u32.totalorder %s1215_s9, %s1493_s1 }
  0x18   : > { %p948_p7 = scmp.ne.s32.totalorder %s1215_s9, %s947_s14  ;;  %p954_p12 = scmp.lt.u32.totalorder %s952_s17, %s947_s14 }
  0x19   : > { %p956_p0 = scmp.lt.u32.totalorder %s947_s14, %s1215_s9 }
  0x1a   : > { %p950_p9 = pnand %p1487_p8, %p948_p7  ;;  %p955_p13 = por %p954_p12, %p953_p11 }
  0x1c   : > { %p951_p10 = pneg %p950_p9  ;;  %p957_p1 = por %p956_p0, %p955_p13 }
  0x1e   : > { %p958_p2 = pnand %p957_p1, %p951_p10 }
  0x20   : > { %961 = shalt.err (!%p958_p2)
}
  0x21   : > { %s962_s27 = scalar_lea.vmem %s1222_s12, 4096  ;;  %s1121_s28 = smov [#allocation6]  }
  0x22   : > { %p963_p3 = scmp.ne.s32.totalorder %s1222_s12, %s962_s27  ;;  %s967_s29 = sshll.u32 %s1121_s28, 4  ;;  %s968_s29 = int_to_ptr.vmem [resolvable:$false] %s967_s29 }
  0x23   : > { %s969_s7 = scalar_lea.vmem %s968_s29, 8192  ;;  %p970_p7 = scmp.lt.s32.totalorder %s1222_s12, %s968_s29 }
  0x24   : > { %p965_p4 = pnand %p963_p3, %p1487_p8  ;;  %p971_p9 = scmp.lt.s32.totalorder %s969_s7, %s962_s27 }
  0x26   : > { %p966_p5 = pneg %p965_p4  ;;  %p972_p11 = por %p971_p9, %p970_p7 }
  0x28   : > { %p973_p12 = pnand %p972_p11, %p966_p5 }
  0x2a   : > { %976 = shalt.err (!%p973_p12)
}
  0x2b   : > { %s1122_s8 = smov 512   ;;  %s1123_s11 = smov 256  }
  0x2c   : > { %s1124_s14 = smov 16   ;;  %s1253_s15 = sadd.s32 4294967295, %s1119_s23  }
  0x2d   : > { %871 = dma.hbm_to_vmem [thread:$0]  (!%p1217_p6), %s1215_s9, 4096, %s1222_s12, %s1224_s13, %s1122_s8, %s1123_s11, %s1124_s14  }
  0x2e   : > { %p78_p10 = scmp.ne.s32.totalorder %s1103_s19, %s1099_s18  ;;  %p1486_p13 = scmp.eq.s32.totalorder %s1253_s15, 0 }
  0x2f   : > { %p727_p0 = scmp.ge.s32.totalorder %s1119_s23, 1  ;;  %p188_p1 = scmp.lt.s32.totalorder %s1119_s23, 3 }
  0x30   : > { %p1262_p2 = por %p1486_p13, %p78_p10  ;;  %s1125_s9 = smov [#allocation3]  }
  0x31   : > { %p1266_p3 = pnand %p727_p0, %p188_p1  ;;  %s203_s12 = sshll.u32 %s1125_s9, 4  ;;  %s1270_s12 = int_to_ptr.vmem [resolvable:$true] %s203_s12 }
  0x32   : > { %s1495_s16 = scalar_select %p1262_p2, 1, 0 }
  0x33   : > { %s1496_s17 = scalar_select %p1266_p3, 1, 0 }
  0x34   : > { %p864_p4 = pneg %p1266_p3  ;;  %s749_s18 = sshll.u32 %s1115_s22, 12 }
  0x35   : > { %s1284_s28 = scalar_lea.hbm %s1483_s3, %s749_s18  ;;  %s253_s29 = scalar_lea.vmem [#allocation8], %s1210_s6 }
  0x36   : > { %p1277_p5 = pnand %p864_p4, %p1486_p13  ;;  %s260_s7 = sshll.u32 %s253_s29, 4  ;;  %s1287_s7 = int_to_ptr.vmem [resolvable:$true] %s260_s7 }
  0x37   : > { %s977_s14 = scalar_lea.hbm %s1480_s0, 256 }
  0x38   : > { %p978_p7 = scmp.ne.s32.totalorder %s1480_s0, %s977_s14  ;;  %p979_p9 = pneg %p1277_p5 }
  0x39   : > { %p984_p10 = scmp.lt.u32.totalorder %s977_s14, %s1480_s0 }
  0x3a   : > { %p980_p11 = pnand %p979_p9, %p978_p7 }
  0x3c   : > { %p981_p12 = pneg %p980_p11 }
  0x3e   : > { %p986_p0 = pnand %p984_p10, %p981_p12 }
  0x40   : > { %989 = shalt.err (!%p986_p0)
}
  0x41   : > { %s990_s6 = scalar_lea.vmem %s1270_s12, 256  ;;  %p998_p8 = scmp.lt.s32.totalorder %s1270_s12, %s1270_s12 }
  0x42   : > { %p991_p1 = scmp.ne.s32.totalorder %s1270_s12, %s990_s6  ;;  %p999_p2 = scmp.lt.s32.totalorder %s990_s6, %s990_s6 }
  0x44   : > { %p993_p4 = pnand %p991_p1, %p979_p9  ;;  %p1000_p3 = por %p999_p2, %p998_p8 }
  0x46   : > { %p994_p13 = pneg %p993_p4 }
  0x48   : > { %p1001_p6 = pnand %p1000_p3, %p994_p13 }
  0x4a   : > { %1004 = shalt.err (!%p1001_p6)
}
  0x4b   : > { %s1126_s1 = smov 128   ;;  %s1127_s18 = smov 8  }
  0x4c   : > { %867 = dma.hbm_to_vmem [thread:$0]  (!%p1277_p5), %s1480_s0, 256, %s1270_s12, [#allocation4], %s1126_s1, %s1126_s1, %s1127_s18  }
  0x4d   : > { %s1005_s11 = scalar_lea.hbm %s1284_s28, 4096  ;;  %p1498_p6 = scmp.ne.s32.totalorder %s1494_s10, 0 }
  0x4e   : > { %p1006_p8 = scmp.ne.s32.totalorder %s1284_s28, %s1005_s11  ;;  %s1010_s26 = scalar_lea.hbm %s1483_s3, 8192 }
  0x4f   : > { %p1499_p13 = pneg %p1498_p6  ;;  %p1011_p7 = scmp.lt.u32.totalorder %s1284_s28, %s1483_s3 }
  0x50   : > { %p1012_p9 = scmp.lt.u32.totalorder %s1010_s26, %s1005_s11  ;;  %p1014_p12 = scmp.lt.u32.totalorder %s1005_s11, %s1284_s28 }
  0x51   : > { %p1008_p2 = pnand %p1006_p8, %p1499_p13 }
  0x52   : > { %p1013_p11 = por %p1012_p9, %p1011_p7 }
  0x53   : > { %p1009_p3 = pneg %p1008_p2 }
  0x54   : > { %p1015_p10 = por %p1014_p12, %p1013_p11 }
  0x56   : > { %p1016_p0 = pnand %p1015_p10, %p1009_p3 }
  0x58   : > { %1019 = shalt.err (!%p1016_p0)
}
  0x59   : > { %s1020_s12 = scalar_lea.vmem %s1287_s7, 4096  ;;  %p1500_p1 = pmov %p1499_p13 }
  0x5a   : > { %p1021_p5 = scmp.ne.s32.totalorder %s1287_s7, %s1020_s12  ;;  %s1128_s25 = smov [#allocation8]  }
  0x5b   : > { %s1025_s29 = sshll.u32 %s1128_s25, 4  ;;  %s1026_s29 = int_to_ptr.vmem [resolvable:$false] %s1025_s29 }
  0x5c   : > { %p1023_p4 = pnand %p1021_p5, %p1500_p1  ;;  %s1027_s8 = scalar_lea.vmem %s1026_s29, 8192 }
  0x5d   : > { %p1028_p13 = scmp.lt.s32.totalorder %s1287_s7, %s1026_s29  ;;  %p1029_p2 = scmp.lt.s32.totalorder %s1027_s8, %s1020_s12 }
  0x5e   : > { %p1024_p8 = pneg %p1023_p4 }
  0x5f   : > { %p1030_p7 = por %p1029_p2, %p1028_p13 }
  0x61   : > { %p1031_p9 = pnand %p1030_p7, %p1024_p8 }
  0x63   : > { %1034 = shalt.err (!%p1031_p9)
}
  0x64   : > { %874 = dma.hbm_to_vmem [thread:$0]  (!%p1498_p6), %s1284_s28, 4096, %s1287_s7, %s1224_s13, %s1126_s1, %s1126_s1, %s1127_s18  }
  0x65   : > { %p1501_p3 = scmp.ne.s32.totalorder %s1496_s17, 0 }
  0x66   : > { %p1502_p11 = scmp.eq.s32.totalorder (!%p1501_p3), %s1253_s15, 0 }
  0x67   : > { %272 = sbr.rel (%p1501_p3) target bundleno = 652 (0x28c), region = 40 }
  0x6e   : > { %1086 = dma.done.wait (%p1502_p11), [#allocation4], 256   ;;  %p1503_p12 = pmov %p1502_p11 }
  0x6f   : > { %s278_s10 = sand.u32 1, %s1253_s15   ;;  %s280_s11 = sand.u32 1, %s1103_s19  }
  0x70   : > { %1088 = vsyncadd (%p1503_p12), [#allocation4], 4294967040  ;;  %s738_s14 = sshll.u32 %s280_s11, 8  ;;  %s279_s9 = scalar_lea.sflag [#allocation7], %s278_s10 }
  0x71   : > { %s1348_s26 = scalar_lea.vmem [#allocation6], %s738_s14  ;;  %p1504_p10 = scmp.ne.s32.totalorder %s1495_s16, 0 }
  0x73   : > { %1090 = dma.done.wait (%p1504_p10), %s279_s9, 8192  }
  0x74   : > { %1092 = vsyncadd (%p1504_p10), %s279_s9, 4294959104  ;;  %s740_s13 = sshll.u32 %s1111_s21, 1  ;;  %s1361_s1 = scalar_lea.vmem [#allocation8], %s738_s14 }
  0x75   : > { %p325_p6 = scmp.lt.s32.totalorder %s740_s13, 3  ;;  %p741_p0 = scmp.ne.s32.totalorder %s1111_s21, 0 }
  0x76   : > { %v1129_v0 = vmov (!%p741_p0), 0.0  }
  0x77   : > { %s1513_s13 = smov (!%p325_p6, %s740_s13), 3  ;;  %334 = sbr.rel (%p741_p0) target bundleno = 126 (0x7e), region = 56 }
  0x78   : > { %s327_s7 = scalar_lea.vmem %s1482_s2, %s1513_s13  ;;  %335 = vst [vmem:[#allocation2] sm:$0xff] (!%p741_p0), %v1129_v0  ;;  %336 = vst [vmem:[#allocation2 + $0x8] sm:$0xff] (!%p741_p0), %v1129_v0 }
  0x7e PF: > { %v340_v1 = vld [vmem:[%s1348_s26 + $0x8] sm:$0xff]  ;;  %v342_v2 = vld [vmem:[%s1348_s26 + $0x18] sm:$0xff]  ;;  %v339_v3 = vld [vmem:[%s1348_s26] sm:$0xff]  ;;  %v1130_v8 = vmov 0.0   ;;  %p742_p5 = scmp.ne.s32.totalorder %s1111_s21, 1 }
  0x7f   : > { %v788_v4 = vpack.c.bf16 %v342_v2, %v340_v1  ;;  %v341_v5 = vld [vmem:[%s1348_s26 + $0x10] sm:$0xff]  ;;  %v344_v6 = vld [vmem:[%s1348_s26 + $0x28] sm:$0xff]  ;;  %v346_v7 = vld [vmem:[%s1348_s26 + $0x38] sm:$0xff]  ;;  %447 = vmatprep.mubr.f32.mxu0 %v1130_v8 }
  0x80   : > { %v790_v9 = vpack.c.bf16 %v341_v5, %v339_v3  ;;  %v792_v10 = vpack.c.bf16 %v346_v7, %v344_v6  ;;  %v343_v11 = vld [vmem:[%s1348_s26 + $0x20] sm:$0xff]  ;;  %v345_v12 = vld [vmem:[%s1348_s26 + $0x30] sm:$0xff]  ;;  %v348_v13 = vld [vmem:[%s1348_s26 + $0x48] sm:$0xff] }
  0x81   : > { %789 = vmatprep.subr.bf16.mxu0 %v788_v4  ;;  %v350_v14 = vld [vmem:[%s1348_s26 + $0x58] sm:$0xff]  ;;  %v794_v15 = vpack.c.bf16 %v345_v12, %v343_v11  ;;  %v347_v17 = vld [vmem:[%s1348_s26 + $0x40] sm:$0xff]  ;;  %v349_v18 = vld [vmem:[%s1348_s26 + $0x50] sm:$0xff] }
  0x82   : > { %791 = vmatpush1.bf16.msra.mxu0 %v790_v9  ;;  %v796_v16 = vpack.c.bf16 %v350_v14, %v348_v13  ;;  %v352_v19 = vld [vmem:[%s1348_s26 + $0x68] sm:$0xff]  ;;  %v354_v20 = vld [vmem:[%s1348_s26 + $0x78] sm:$0xff]  ;;  %v798_v21 = vpack.c.bf16 %v349_v18, %v347_v17  ;;  %v351_v23 = vld [vmem:[%s1348_s26 + $0x60] sm:$0xff] }
  0x83   : > { %793 = vmatprep.subr.bf16.mxu0 %v792_v10  ;;  %v800_v22 = vpack.c.bf16 %v354_v20, %v352_v19  ;;  %v353_v24 = vld [vmem:[%s1348_s26 + $0x70] sm:$0xff]  ;;  %v356_v25 = vld [vmem:[%s1348_s26 + $0x88] sm:$0xff]  ;;  %v358_v26 = vld [vmem:[%s1348_s26 + $0x98] sm:$0xff] }
  0x84   : > { %v355_v27 = vld [vmem:[%s1348_s26 + $0x80] sm:$0xff]  ;;  %v357_v28 = vld [vmem:[%s1348_s26 + $0x90] sm:$0xff]  ;;  %v499_v30 = vld [vmem:[%s1361_s1 + $0x88] sm:$0xff]  ;;  %v802_v31 = vpack.c.bf16 %v353_v24, %v351_v23  ;;  %v804_v37 = vpack.c.bf16 %v358_v26, %v356_v25 }
  0x85   : > { %v498_v29 = vld [vmem:[%s1361_s1 + $0x80] sm:$0xff]  ;;  %v360_v32 = vld [vmem:[%s1348_s26 + $0xa8] sm:$0xff]  ;;  %v500_v36 = vld [vmem:[%s1361_s1 + $0x90] sm:$0xff]  ;;  %v806_v47 = vpack.c.bf16 %v357_v28, %v355_v27 }
  0x86   : > { %795 = vmatpush1.bf16.msra.mxu0 %v794_v15  ;;  %v820_v33 = vpack.c.bf16 %v499_v30, %v498_v29  ;;  %v482_v34 = vld [vmem:[%s1361_s1] sm:$0xff]  ;;  %v483_v35 = vld [vmem:[%s1361_s1 + $0x8] sm:$0xff]  ;;  %v501_v39 = vld [vmem:[%s1361_s1 + $0x98] sm:$0xff] }
  0x87   : > { %797 = vmatprep.subr.bf16.mxu0 %v796_v16  ;;  %v822_v38 = vpack.c.bf16 %v483_v35, %v482_v34  ;;  %v484_v40 = vld [vmem:[%s1361_s1 + $0x10] sm:$0xff]  ;;  %v485_v41 = vld [vmem:[%s1361_s1 + $0x18] sm:$0xff]  ;;  %v824_v43 = vpack.c.bf16 %v501_v39, %v500_v36  ;;  %v502_v44 = vld [vmem:[%s1361_s1 + $0xa0] sm:$0xff]  ;;  %v373_v36 = vlaneseq }
  0x88   : > { %v362_v42 = vld [vmem:[%s1348_s26 + $0xb8] sm:$0xff]  ;;  %821 = vmatprep.subr.bf16.mxu1 %v820_v33  ;;  %v503_v45 = vld [vmem:[%s1361_s1 + $0xa8] sm:$0xff]  ;;  %v826_v46 = vpack.c.bf16 %v485_v41, %v484_v40  ;;  %v486_v49 = vld [vmem:[%s1361_s1 + $0x20] sm:$0xff] }
  0x89   : > { %823 = vmatpush3.bf16.msra.mxu1 %v822_v38  ;;  %v828_v48 = vpack.c.bf16 %v503_v45, %v502_v44  ;;  %v487_v50 = vld [vmem:[%s1361_s1 + $0x28] sm:$0xff]  ;;  %v808_v51 = vpack.c.bf16 %v362_v42, %v360_v32  ;;  %v359_v52 = vld [vmem:[%s1348_s26 + $0xa0] sm:$0xff]  ;;  %v361_v53 = vld [vmem:[%s1348_s26 + $0xb0] sm:$0xff] }
  0x8a   : > { %799 = vmatpush1.bf16.msra.mxu0 %v798_v21  ;;  %825 = vmatprep.subr.bf16.mxu1 %v824_v43  ;;  %v364_v54 = vld [vmem:[%s1348_s26 + $0xc8] sm:$0xff]  ;;  %v366_v55 = vld [vmem:[%s1348_s26 + $0xd8] sm:$0xff]  ;;  %v830_v56 = vpack.c.bf16 %v487_v50, %v486_v49  ;;  %v810_v57 = vpack.c.bf16 %v361_v53, %v359_v52  ;;  %v363_v59 = vld [vmem:[%s1348_s26 + $0xc0] sm:$0xff] }
  0x8b   : > { %801 = vmatprep.subr.bf16.mxu0 %v800_v22  ;;  %v812_v58 = vpack.c.bf16 %v366_v55, %v364_v54  ;;  %v365_v60 = vld [vmem:[%s1348_s26 + $0xd0] sm:$0xff]  ;;  %v368_v61 = vld [vmem:[%s1348_s26 + $0xe8] sm:$0xff]  ;;  %v370_v62 = vld [vmem:[%s1348_s26 + $0xf8] sm:$0xff] }
  0x8c   : > { %v814_v63 = vpack.c.bf16 %v365_v60, %v363_v59  ;;  %v816_v0 = vpack.c.bf16 %v370_v62, %v368_v61  ;;  %v367_v1 = vld [vmem:[%s1348_s26 + $0xe0] sm:$0xff]  ;;  %v369_v2 = vld [vmem:[%s1348_s26 + $0xf0] sm:$0xff]  ;;  %v338_v5 = vld [vmem:[#allocation3 + $0x8] sm:$0xff] }
  0x8d   : > { %827 = vmatpush3.bf16.msra.mxu1 %v826_v46  ;;  %v818_v3 = vpack.c.bf16 %v369_v2, %v367_v1  ;;  %v337_v4 = vld [vmem:[#allocation3] sm:$0xff]  ;;  %v505_v7 = vld [vmem:[%s1361_s1 + $0xb8] sm:$0xff]  ;;  %v506_v13 = vld [vmem:[%s1361_s1 + $0xc0] sm:$0xff] }
  0x8e   : > { %803 = vmatpush1.bf16.msra.mxu0 %v802_v31  ;;  %829 = vmatprep.subr.bf16.mxu1 %v828_v48  ;;  %v504_v6 = vld [vmem:[%s1361_s1 + $0xb0] sm:$0xff]  ;;  %v489_v11 = vld [vmem:[%s1361_s1 + $0x38] sm:$0xff]  ;;  %v507_v14 = vld [vmem:[%s1361_s1 + $0xc8] sm:$0xff] }
  0x8f   : > { %805 = vmatprep.subr.bf16.mxu0 %v804_v37  ;;  %v832_v9 = vpack.c.bf16 %v505_v7, %v504_v6  ;;  %v488_v10 = vld [vmem:[%s1361_s1 + $0x30] sm:$0xff]  ;;  %v836_v15 = vpack.c.bf16 %v507_v14, %v506_v13  ;;  %v491_v16 = vld [vmem:[%s1361_s1 + $0x48] sm:$0xff]  ;;  %v509_v19 = vld [vmem:[%s1361_s1 + $0xd8] sm:$0xff]  ;;  %v374_v37 = vshrl.u32 %v373_v36, 7 }
  0x90   : > { %v834_v12 = vpack.c.bf16 %v489_v11, %v488_v10  ;;  %v508_v18 = vld [vmem:[%s1361_s1 + $0xd0] sm:$0xff]  ;;  %v493_v22 = vld [vmem:[%s1361_s1 + $0x58] sm:$0xff]  ;;  %v510_v24 = vld [vmem:[%s1361_s1 + $0xe0] sm:$0xff] }
  0x91   : > { %831 = vmatpush3.bf16.msra.mxu1 %v830_v56  ;;  %v840_v20 = vpack.c.bf16 %v509_v19, %v508_v18  ;;  %v492_v21 = vld [vmem:[%s1361_s1 + $0x50] sm:$0xff]  ;;  %v511_v25 = vld [vmem:[%s1361_s1 + $0xe8] sm:$0xff]  ;;  %v494_v27 = vld [vmem:[%s1361_s1 + $0x60] sm:$0xff]  ;;  %v375_v38 = vsub.s32 0, %v374_v37  ;;  %v379_v40 = vsub.s32 1, %v374_v37 }
  0x92   : > { %807 = vmatpush1.bf16.msra.mxu0 %v806_v47  ;;  %833 = vmatprep.subr.bf16.mxu1 %v832_v9  ;;  %v842_v23 = vpack.c.bf16 %v493_v22, %v492_v21  ;;  %v844_v26 = vpack.c.bf16 %v511_v25, %v510_v24  ;;  %v495_v28 = vld [vmem:[%s1361_s1 + $0x68] sm:$0xff]  ;;  %v512_v30 = vld [vmem:[%s1361_s1 + $0xf0] sm:$0xff]  ;;  %v513_v31 = vld [vmem:[%s1361_s1 + $0xf8] sm:$0xff] }
  0x93   : > { %809 = vmatprep.subr.bf16.mxu0 %v808_v51  ;;  %v846_v29 = vpack.c.bf16 %v495_v28, %v494_v27  ;;  %v848_v32 = vpack.c.bf16 %v513_v31, %v512_v30  ;;  %v496_v33 = vld [vmem:[%s1361_s1 + $0x70] sm:$0xff]  ;;  %v497_v34 = vld [vmem:[%s1361_s1 + $0x78] sm:$0xff]  ;;  %v371_v39 = vld [vmem:[%s327_s7] sm:$0x3] }
  0x94   : > { %v850_v35 = vpack.c.bf16 %v497_v34, %v496_v33  ;;  %v376_v41 = vrot.slane %v371_v39, %v375_v38  ;;  %v380_v42 = vrot.slane %v371_v39, %v379_v40  ;;  %v480_v9 = vld [vmem:[#allocation2] sm:$0xff]  ;;  %v481_v14 = vld [vmem:[#allocation2 + $0x8] sm:$0xff] }
  0x95   : > { %835 = vmatpush3.bf16.msra.mxu1 %v834_v12  ;;  %v743_v18 = vld [vmem:[%s1484_s4] ss:$0 sm:$0xff] (!%p742_p5) }
  0x96   : > { %811 = vmatpush1.bf16.msra.mxu0 %v810_v57  ;;  %837 = vmatprep.subr.bf16.mxu1 %v836_v15 }
  0x97   : > { %813 = vmatprep.subr.bf16.mxu0 %v812_v58 }
  0x9a   : > { %815 = vmatpush1.bf16.msra.mxu0 %v814_v63 }
  0x9b   : > { %817 = vmatprep.subr.bf16.mxu0 %v816_v0 }
  0x9e   : > { %819 = vmatpush1.bf16.msra.mxu0 %v818_v3 }
  0xa1   : > { %448 = vmatmul.mubr.f32.vlgmr.msra.gmra.mrb[0].mxu0 %v337_v4 }
  0xa2   : > { %453 = vmatprep.mubr.f32.mxu0 %v1130_v8  ;;  %v490_v8 = vld [vmem:[%s1361_s1 + $0x40] sm:$0xff] }
  0xa3   : > { %v838_v17 = vpack.c.bf16 %v491_v16, %v490_v8 }
  0xa5   : > { %454 = vmatmul.mubr.f32.gmra.mrb[2].mxu0 %v338_v5  ;;  %839 = vmatpush3.bf16.msra.mxu1 %v838_v17 }
  0xa6   : > { %841 = vmatprep.subr.bf16.mxu1 %v840_v20 }
  0xa9   : > { %843 = vmatpush3.bf16.msra.mxu1 %v842_v23 }
  0xaa   : > { %845 = vmatprep.subr.bf16.mxu1 %v844_v26 }
  0xad   : > { %847 = vmatpush3.bf16.msra.mxu1 %v846_v29 }
  0xae   : > { %849 = vmatprep.subr.bf16.mxu1 %v848_v32 }
  0xb1   : > { %851 = vmatpush3.bf16.msra.mxu1 %v850_v35 }
 0x174   : > { %v449_v43 = vpop.f32.mrb[0].mxu0 }
 0x175   : > { %v450_v44 = vadd.f32 %v449_v43, %v376_v41  ;;  %v451_v45 = vpop.f32.mrb[1].mxu0 }
 0x176   : > { %v452_v46 = vadd.f32 %v451_v45, %v380_v42 }
 0x177   : > { %v464_v47 = vmul.f32 0.70710677, %v450_v44  ;;  %v460_v60 = vmul.f32 0.5, %v450_v44 }
 0x178   : > { %v465_v48 = vmul.f32 0.70710677, %v452_v46  ;;  %v455_v49 = vpop.f32.mrb[2].mxu0  ;;  %v461_v58 = vmul.f32 0.5, %v452_v46 }
 0x179   : > { %939 = verf.f32 %v464_v47  ;;  %v456_v50 = vadd.f32 %v455_v49, %v376_v41  ;;  %v457_v51 = vpop.f32.mrb[3].mxu0 }
 0x17a   : > { %941 = verf.f32 %v465_v48  ;;  %v458_v52 = vadd.f32 %v457_v51, %v380_v42 }
 0x17b   : > { %v466_v53 = vmul.f32 0.70710677, %v456_v50  ;;  %v462_v4 = vmul.f32 0.5, %v456_v50 }
 0x17c   : > { %v467_v54 = vmul.f32 0.70710677, %v458_v52  ;;  %v463_v2 = vmul.f32 0.5, %v458_v52 }
 0x17d   : > { %943 = verf.f32 %v466_v53 }
 0x17e   : > { %945 = verf.f32 %v467_v54 }
 0x183   : > { %v940_v55 = vpop.eup %939 }
 0x184   : > { %v942_v56 = vpop.eup %941  ;;  %v472_v57 = vadd.f32 1.0, %v940_v55 }
 0x185   : > { %v473_v59 = vadd.f32 1.0, %v942_v56 }
 0x186   : > { %v476_v1 = vmul.f32 %v472_v57, %v460_v60 }
 0x187   : > { %v944_v61 = vpop.eup %943  ;;  %v477_v62 = vmul.f32 %v473_v59, %v461_v58 }
 0x188   : > { %v946_v63 = vpop.eup %945  ;;  %v474_v0 = vadd.f32 1.0, %v944_v61 }
 0x189   : > { %v475_v3 = vadd.f32 1.0, %v946_v63  ;;  %578 = vmatprep.mubr.f32.mxu1 %v477_v62 }
 0x18a   : > { %579 = vmatmul.mubr.f32.vlgmr.msra.gmra.mrb[0].mxu1 %v476_v1  ;;  %v478_v6 = vmul.f32 %v474_v0, %v462_v4 }
 0x18b   : > { %v479_v5 = vmul.f32 %v475_v3, %v463_v2 }
 0x18d   : > { %583 = vmatprep.mubr.f32.mxu1 %v479_v5 }
 0x18e   : > { %584 = vmatmul.mubr.f32.gmra.mrb[2].mxu1 %v478_v6 }
 0x25d   : > { %v782_v7 = vpop.f32.mrb[0].mxu1 }
 0x25e   : > { %v783_v10 = vpop.f32.mrb[1].mxu1 }
 0x25f   : > { %v784_v11 = vadd.f32 %v783_v10, %v782_v7 }
 0x261   : > { %v589_v12 = vadd.f32 %v784_v11, %v480_v9  ;;  %v785_v13 = vpop.f32.mrb[2].mxu1  ;;  %596 = sbr.rel (%p742_p5) target bundleno = 626 (0x272), region = 60 }
 0x262   : > { %v786_v15 = vpop.f32.mrb[3].mxu1 }
 0x263   : > { %591 = vst [vmem:[#allocation2] sm:$0xff] %v589_v12  ;;  %v787_v8 = vadd.f32 %v786_v15, %v785_v13 }
 0x265   : > { %v590_v16 = vadd.f32 %v787_v8, %v481_v14 }
 0x267   : > { %592 = vst [vmem:[#allocation2 + $0x8] sm:$0xff] %v590_v16 }
 0x26a   : > { %v597_v17 = vld [vmem:[#allocation2] sm:$0xff] }
 0x26b   : > { %v606_v20 = vadd.f32 %v743_v18, %v597_v17 }
 0x26d   : > { %608 = vst [vmem:[#allocation9] sm:$0xff] %v606_v20 }
 0x26e   : > { %v598_v19 = vld [vmem:[#allocation2 + $0x8] sm:$0xff] }
 0x26f   : > { %v607_v21 = vadd.f32 %v743_v18, %v598_v19 }
 0x271   : > { %609 = vst [vmem:[#allocation9 + $0x8] sm:$0xff] %v607_v21 }
 0x272 PF: > { %p878_p1 = scmp.eq.s32.totalorder %s1253_s15, 1  ;;  %s1131_s12 = smov [#allocation9]  }
 0x273   : > { %s619_s25 = sshll.u32 %s1131_s12, 4  ;;  %s620_s25 = int_to_ptr.vmem [resolvable:$true] %s619_s25 }
 0x274   : > { %s1035_s29 = scalar_lea.vmem %s620_s25, 256  ;;  %p1042_p2 = scmp.lt.s32.totalorder %s620_s25, %s620_s25 }
 0x275   : > { %p1036_p4 = scmp.ne.s32.totalorder %s620_s25, %s1035_s29  ;;  %p1043_p7 = scmp.lt.s32.totalorder %s1035_s29, %s1035_s29 }
 0x277   : > { %p1037_p8 = pnand %p1036_p4, %p878_p1  ;;  %p1044_p9 = por %p1043_p7, %p1042_p2 }
 0x279   : > { %p1038_p13 = pneg %p1037_p8 }
 0x27b   : > { %p1045_p3 = pnand %p1044_p9, %p1038_p13 }
 0x27d   : > { %1048 = shalt.err (!%p1045_p3)
}
 0x27e   : > { %s1049_s10 = scalar_lea.hbm %s1485_s5, 256 }
 0x27f   : > { %p1050_p11 = scmp.ne.s32.totalorder %s1485_s5, %s1049_s10  ;;  %p1055_p6 = scmp.lt.u32.totalorder %s1049_s10, %s1485_s5 }
 0x281   : > { %p1051_p12 = pnand %p1050_p11, %p878_p1 }
 0x283   : > { %p1052_p10 = pneg %p1051_p12 }
 0x285   : > { %p1057_p0 = pnand %p1055_p6, %p1052_p10 }
 0x287   : > { %1060 = shalt.err (!%p1057_p0)
}
 0x288   : > { %s1132_s13 = smov 128   ;;  %s1133_s17 = smov 8  }
 0x289   : > { %861 = dma.vmem_to_hbm [thread:$0]  (%p878_p1), %s620_s25, 256, %s1485_s5, [#allocation5], %s1132_s13, %s1132_s13, %s1133_s17  }
 0x28a   : > { %1094 = dma.done.wait (%p878_p1), [#allocation5], 256  }
 0x28b   : > { %1096 = vsyncadd (%p878_p1), [#allocation5], 4294967040 }
 0x28c PF: > { %s20_s23 = sadd.s32 1, %s1119_s23   ;;  %s1505_s18 = smov %s1103_s19 }
 0x28d   : > { %p17_p5 = scmp.ge.s32.totalorder %s20_s23, 4   ;;  %s1506_s19 = smov %s1107_s20 }
 0x28e   : > { %s1507_s20 = smov %s1208_s30  ;;  %s1508_s21 = smov %s1115_s22 }
 0x28f   : > { %s1509_s22 = smov %s1511_s24  ;;  %19 = sbr.rel (!%p17_p5) target bundleno = 8 (0x8), region = 106 }
 0x296   :  { %635 = vsyncpa [#allocation4], 1 }
 0x297   :  { %637 = vsyncpa [#allocation4 + $0x1], 1 }
 0x298   :  { %638 = vsyncpa [#allocation7], 1 }
 0x299   :  { %640 = vsyncpa [#allocation7 + $0x1], 1 }
 0x29a   :  { %641 = vsyncpa [#allocation5], 1 }
 0x29b   :  { %643 = vsyncpa [#allocation5 + $0x1], 1 }

</bundles_post_ra>
